<compile_context>
chip_gen: v5e
topology: v5e:2x2
jax: 0.10.0
libtpu: 0.0.40
codegen_flags: <defaults>
</compile_context>

<pallas_src>
import functools

import jax
import jax.numpy as jnp
from jax.experimental import pallas as pl
from jax.experimental.pallas import tpu as pltpu


def _ln(x, g, b, eps=1e-5):
    """LayerNorm over the last dim, fp32 statistics (matches torch LayerNorm)."""
    mu = jnp.mean(x, axis=-1, keepdims=True)
    var = jnp.mean(jnp.square(x - mu), axis=-1, keepdims=True)
    return (x - mu) * jax.lax.rsqrt(var + eps) * g + b


# --------------------------- tiled matmul kernel ----------------------------

def _matmul_kernel(a_ref, b_ref, o_ref, acc_ref):
    @pl.when(pl.program_id(2) == 0)
    def _():
        acc_ref[...] = jnp.zeros_like(acc_ref)
    acc_ref[...] += jnp.dot(a_ref[...].astype(jnp.bfloat16),
                            b_ref[...].astype(jnp.bfloat16),
                            preferred_element_type=jnp.float32)

    @pl.when(pl.program_id(2) == pl.num_programs(2) - 1)
    def _():
        o_ref[...] = acc_ref[...].astype(o_ref.dtype)


def _pick_tile(n, candidates):
    """Largest candidate tile that evenly divides n (n >= c); else the full dim."""
    for c in candidates:
        if n >= c and n % c == 0:
            return c
    return n


def pallas_matmul(a, b, out_dtype=jnp.float32):
    """C = A @ B with bf16 MXU operands and fp32 accumulation, tiled."""
    M, K = a.shape
    K2, N = b.shape
    assert K == K2
    tm = _pick_tile(M, (512, 256, 128))
    tn = _pick_tile(N, (512, 256, 128))
    # Modest tk so (tm*tk + tk*tn) double-buffered stays comfortable on v7x.
    tk = _pick_tile(K, (512, 256, 128))
    grid = (M // tm, N // tn, K // tk)
    return pl.pallas_call(
        _matmul_kernel,
        out_shape=jax.ShapeDtypeStruct((M, N), out_dtype),
        grid_spec=pltpu.PrefetchScalarGridSpec(
            num_scalar_prefetch=0,
            grid=grid,
            in_specs=[pl.BlockSpec((tm, tk), lambda i, j, k: (i, k)),
                      pl.BlockSpec((tk, tn), lambda i, j, k: (k, j))],
            out_specs=pl.BlockSpec((tm, tn), lambda i, j, k: (i, j)),
            scratch_shapes=[pltpu.VMEM((tm, tn), jnp.float32)],
        ),
        compiler_params=pltpu.CompilerParams(
            dimension_semantics=("parallel", "parallel", "arbitrary")),
    )(a, b)


# ---------------------- fused transformer encoder kernel --------------------

def _encoder_kernel(x_ref,
                    lnpre_g_ref, lnpre_b_ref, lnpost_g_ref, lnpost_b_ref,
                    ln1_g_ref, ln1_b_ref, wqkv_ref, bqkv_ref, wo_ref, bo_ref,
                    ln2_g_ref, ln2_b_ref, wfc_ref, bfc_ref, wpr_ref, bpr_ref,
                    o_ref, acc_ref, *, n_head, s_real, fuse_ln_post):
    """One grid step == (batch block of Bt images, one layer).

    Grid is (B//Bt, L); the (Bt, S, D) activation is carried across the L axis
    in the fp32 VMEM scratch `acc_ref`. ln_pre is fused at l==0, ln_post (when
    skip_last_layer) at l==L-1. Layer weights are amortized over Bt images.
    """
    l = pl.program_id(1)
    n_layers = pl.num_programs(1)
    Bt, S, D = acc_ref.shape
    hd = D // n_head
    NH = Bt * n_head
    bf16, f32 = jnp.bfloat16, jnp.float32

    # Seed the resident activation with ln_pre(x) at the first layer.
    @pl.when(l == 0)
    def _():
        acc_ref[...] = _ln(x_ref[...].astype(f32),
                           lnpre_g_ref[...], lnpre_b_ref[...])

    x = acc_ref[...]                                            # (Bt, S, D) fp32

    # ---- ln_1 + multi-head self-attention (eval: dropout == identity) ----
    h = _ln(x, ln1_g_ref[0], ln1_b_ref[0]).reshape(Bt * S, D)
    # 1/sqrt(hd) query scale is pre-folded into wqkv/bqkv (Q columns).
    qkv = jnp.dot(h.astype(bf16), wqkv_ref[0],
                  preferred_element_type=f32) + bqkv_ref[0]     # (Bt*S, 3D)
    qkv = qkv.reshape(Bt, S, 3 * D)

    def to_heads(t):  # (Bt, S, D) -> (Bt*H, S, hd), head-major batched layout
        return (t.astype(bf16).reshape(Bt, S, n_head, hd)
                .transpose(0, 2, 1, 3).reshape(NH, S, hd))

    q = to_heads(qkv[:, :, 0 * D:1 * D])
    k = to_heads(qkv[:, :, 1 * D:2 * D])
    v = to_heads(qkv[:, :, 2 * D:3 * D])

    scores = jnp.einsum('nqd,nkd->nqk', q, k,
                        preferred_element_type=f32)             # (Bt*H, S, S)
    if s_real < S:
        # Mask padded key columns (static pad length -> trace-time branch).
        kid = jax.lax.broadcasted_iota(jnp.int32, (1, S), 1)
        scores = scores + jnp.where(kid < s_real, 0.0, -1e30).astype(f32)
    m = jnp.max(scores, axis=-1, keepdims=True)
    e = jnp.exp(scores - m)                                     # fp32, unnormalized
    inv = pl.reciprocal(jnp.sum(e, axis=-1, keepdims=True), approx=True)
    ctx = jnp.einsum('nqk,nkd->nqd', e.astype(bf16), v,
                     preferred_element_type=f32)                # (Bt*H, S, hd)
    ctx = ctx * inv                                             # deferred softmax norm
    ctx = (ctx.reshape(Bt, n_head, S, hd).transpose(0, 2, 1, 3)
              .reshape(Bt * S, D))
    attn = jnp.dot(ctx.astype(bf16), wo_ref[0],
                   preferred_element_type=f32) + bo_ref[0]
    x1 = x + attn.reshape(Bt, S, D)

    # ---- ln_2 + QuickGELU MLP ----
    h2 = _ln(x1, ln2_g_ref[0], ln2_b_ref[0]).reshape(Bt * S, D)
    f = jnp.dot(h2.astype(bf16), wfc_ref[0],
                preferred_element_type=f32) + bfc_ref[0]        # (Bt*S, F)
    f = f * jax.nn.sigmoid(1.702 * f)                           # QuickGELU
    y = jnp.dot(f.astype(bf16), wpr_ref[0],
                preferred_element_type=f32) + bpr_ref[0]
    out = x1 + y.reshape(Bt, S, D)
    acc_ref[...] = out

    @pl.when(l == n_layers - 1)
    def _():
        if fuse_ln_post:
            o_ref[...] = _ln(out, lnpost_g_ref[...],
                             lnpost_b_ref[...]).astype(o_ref.dtype)
        else:
            o_ref[...] = out.astype(o_ref.dtype)


def _vmem_budget_bytes():
    """~85% of physical VMEM (v5e/v6e 128 MiB, v7x 64 MiB); safe fallback."""
    cap = None
    try:
        info = pltpu.get_tpu_info()
        cap = getattr(info, 'vmem_capacity_bytes', None)
    except Exception:
        cap = None
    if not cap:
        cap = 64 * 2 ** 20      # conservative: fits every generation
    return int(cap * 0.85)


def _encoder_vmem_bytes(Bt, S, D, F, H):
    """Rough VMEM footprint of one encoder grid step (with 25% slack)."""
    w_layer = 2 * (3 * D * D + D * D + 2 * D * F)      # bf16 weights, one layer
    small = 4 * (10 * D + 2 * F)                       # biases + LN params (fp32)
    weights = 2 * (w_layer + small)                    # double-buffered over L
    io = 2 * 2 * 4 * Bt * S * D                        # x + out blocks, 2 buffers
    scratch = 4 * Bt * S * D                           # resident fp32 activation
    interm = 4 * Bt * (3 * S * D + 3 * S * D + 2 * H * S * S
                       + 2 * S * D + S * F + 2 * S * D)
    return int(1.25 * (weights + io + scratch + interm))


def _pick_bt(B, S, D, F, H, budget):
    """Largest batch block (<= 8, divides B) whose estimate fits the budget."""
    bt = 1
    for cand in range(1, min(B, 8) + 1):
        if B % cand == 0 and _encoder_vmem_bytes(cand, S, D, F, H) <= budget:
            bt = cand
    return bt


def pallas_encoder(xs, p, n_head, s_real, fuse_ln_post):
    B, S, D = xs.shape
    L = p['w_qkv'].shape[0]
    F = p['w_fc'].shape[-1]
    assert L >= 1

    budget = _vmem_budget_bytes()
    Bt = _pick_bt(B, S, D, F, n_head, budget)

    kernel = functools.partial(_encoder_kernel, n_head=n_head, s_real=s_real,
                               fuse_ln_post=fuse_ln_post)

    bmap = lambda bb, l: (bb, 0, 0)    # batch-block-indexed, resident across L
    lmap = lambda bb, l: (l, 0, 0)     # layer-indexed -> weights stream per l
    cmap = lambda bb, l: (0, 0)        # constants

    in_specs = [
        pl.BlockSpec((Bt, S, D), bmap),            # x
        pl.BlockSpec((1, D), cmap),                # ln_pre_g
        pl.BlockSpec((1, D), cmap),                # ln_pre_b
        pl.BlockSpec((1, D), cmap),                # ln_post_g
        pl.BlockSpec((1, D), cmap),                # ln_post_b
        pl.BlockSpec((1, 1, D), lmap),             # ln1_g
        pl.BlockSpec((1, 1, D), lmap),             # ln1_b
        pl.BlockSpec((1, D, 3 * D), lmap),         # w_qkv (bf16)
        pl.BlockSpec((1, 1, 3 * D), lmap),         # b_qkv
        pl.BlockSpec((1, D, D), lmap),             # w_o   (bf16)
        pl.BlockSpec((1, 1, D), lmap),             # b_o
        pl.BlockSpec((1, 1, D), lmap),             # ln2_g
        pl.BlockSpec((1, 1, D), lmap),             # ln2_b
        pl.BlockSpec((1, D, F), lmap),             # w_fc  (bf16)
        pl.BlockSpec((1, 1, F), lmap),             # b_fc
        pl.BlockSpec((1, F, D), lmap),             # w_proj (bf16)
        pl.BlockSpec((1, 1, D), lmap),             # b_proj
    ]
    out_specs = pl.BlockSpec((Bt, S, D), bmap)

    return pl.pallas_call(
        kernel,
        out_shape=jax.ShapeDtypeStruct((B, S, D), xs.dtype),
        grid_spec=pltpu.PrefetchScalarGridSpec(
            num_scalar_prefetch=0,
            grid=(B // Bt, L),
            in_specs=in_specs,
            out_specs=out_specs,
            scratch_shapes=[pltpu.VMEM((Bt, S, D), jnp.float32)],
        ),
        compiler_params=pltpu.CompilerParams(
            dimension_semantics=("parallel", "arbitrary"),
            vmem_limit_bytes=budget),
    )(xs, p['ln_pre_g'], p['ln_pre_b'], p['ln_post_g'], p['ln_post_b'],
      p['ln1_g'], p['ln1_b'], p['w_qkv'], p['b_qkv'], p['w_o'], p['b_o'],
      p['ln2_g'], p['ln2_b'], p['w_fc'], p['b_fc'], p['w_pr'], p['b_pr'])


# --------------------------- param packing & glue ---------------------------

def _pack_encoder_params(params):
    """Stack per-layer params to (L, ...), cast weights to bf16, fold q-scale."""
    D = params['width']
    hd = D // params['heads']
    scale = float(hd) ** -0.5
    layers = params['layers']
    stack = lambda key: jnp.stack([lp[key] for lp in layers], axis=0)

    w_qkv = stack('w_qkv_t')                      # (L, D, 3D) fp32
    b_qkv = stack('b_qkv')                        # (L, 1, 3D) fp32
    qscale = jnp.concatenate([jnp.full((D,), scale, jnp.float32),
                              jnp.ones((2 * D,), jnp.float32)])
    w_qkv = w_qkv * qscale[None, None, :]
    b_qkv = b_qkv * qscale[None, None, :]

    return dict(
        ln_pre_g=params['ln_pre_g'], ln_pre_b=params['ln_pre_b'],
        ln_post_g=params['ln_post_g'], ln_post_b=params['ln_post_b'],
        ln1_g=stack('ln1_g'), ln1_b=stack('ln1_b'),
        ln2_g=stack('ln2_g'), ln2_b=stack('ln2_b'),
        w_qkv=w_qkv.astype(jnp.bfloat16), b_qkv=b_qkv,
        w_o=stack('w_o_t').astype(jnp.bfloat16), b_o=stack('b_o'),
        w_fc=stack('w_fc_t').astype(jnp.bfloat16), b_fc=stack('b_fc'),
        w_pr=stack('w_proj_t').astype(jnp.bfloat16), b_pr=stack('b_proj'),
    )


def mplug_visual_transformer_forward(x, params, skip_last_layer=True):
    B, C, H, W = x.shape
    ps, Dm, heads = params['patch_size'], params['width'], params['heads']
    Hp, Wp = H // ps, W // ps
    P = Hp * Wp

    # Patch-embedding conv (kernel==stride, no bias) == patch flatten + matmul.
    patches = x.reshape(B, C, Hp, ps, Wp, ps).transpose(0, 2, 4, 1, 3, 5)
    patches = patches.reshape(B * P, C * ps * ps).astype(jnp.bfloat16)
    emb = pallas_matmul(patches,
                        params['conv_w_t'].astype(jnp.bfloat16)).reshape(B, P, Dm)

    # class token + positional embedding (elementwise glue, fp32).
    cls = jnp.broadcast_to(params['class_embedding'][None, None, :],
                           (B, 1, Dm)).astype(emb.dtype)
    xs = jnp.concatenate([cls, emb], axis=1)
    S = xs.shape[1]
    xs = xs + params['positional_embedding'][:S, :][None]

    # Pad the sequence to a multiple of 8 (sublane-dense activations / stores);
    # padded key columns are masked inside the kernel, padded rows sliced off.
    Sp = ((S + 7) // 8) * 8
    if Sp != S:
        xs = jnp.pad(xs, ((0, 0), (0, Sp - S), (0, 0)))

    # Fused ln_pre + L residual attention blocks (+ ln_post when requested).
    packed = _pack_encoder_params(params)
    ys = pallas_encoder(xs, packed, heads, s_real=S,
                        fuse_ln_post=skip_last_layer)
    ys = ys[:, :S, :]

    if not skip_last_layer:
        # Matches the PyTorch module: proj is applied WITHOUT ln_post.
        ys = pallas_matmul(ys.reshape(B * S, Dm).astype(jnp.bfloat16),
                           params['proj'].astype(jnp.bfloat16)).reshape(B, S, -1)
    return ys


# --------------------------- deterministic params ---------------------------

def init_params(key, input_resolution, patch_size, width, layers, heads,
                output_dim):
    ks = jax.random.split(key, 8 + layers)
    scale = width ** (-0.5)
    P = (input_resolution // patch_size) ** 2
    conv_w = 0.05 * jax.random.normal(
        ks[0], (width, 3, patch_size, patch_size), jnp.float32)
    params = dict(
        patch_size=patch_size, width=width, heads=heads,
        conv_w_t=conv_w.reshape(width, 3 * patch_size * patch_size).T,
        class_embedding=scale * jax.random.normal(ks[1], (width,), jnp.float32),
        positional_embedding=scale * jax.random.normal(
            ks[2], (P + 1, width), jnp.float32),
        ln_pre_g=1.0 + 0.05 * jax.random.normal(ks[3], (1, width), jnp.float32),
        ln_pre_b=0.05 * jax.random.normal(ks[4], (1, width), jnp.float32),
        ln_post_g=1.0 + 0.05 * jax.random.normal(ks[5], (1, width), jnp.float32),
        ln_post_b=0.05 * jax.random.normal(ks[6], (1, width), jnp.float32),
        proj=scale * jax.random.normal(ks[7], (width, output_dim), jnp.float32),
        layers=[],
    )
    D = width
    for li in range(layers):
        lk = jax.random.split(ks[8 + li], 12)
        in_proj_w = 0.05 * jax.random.normal(lk[0], (3 * D, D), jnp.float32)
        in_proj_b = 0.05 * jax.random.normal(lk[1], (3 * D,), jnp.float32)
        out_w = 0.05 * jax.random.normal(lk[2], (D, D), jnp.float32)
        out_b = 0.05 * jax.random.normal(lk[3], (D,), jnp.float32)
        fc_w = 0.05 * jax.random.normal(lk[4], (4 * D, D), jnp.float32)
        fc_b = 0.05 * jax.random.normal(lk[5], (4 * D,), jnp.float32)
        pr_w = 0.05 * jax.random.normal(lk[6], (D, 4 * D), jnp.float32)
        pr_b = 0.05 * jax.random.normal(lk[7], (D,), jnp.float32)
        params['layers'].append(dict(
            ln1_g=1.0 + 0.05 * jax.random.normal(lk[8], (1, D), jnp.float32),
            ln1_b=0.05 * jax.random.normal(lk[9], (1, D), jnp.float32),
            ln2_g=1.0 + 0.05 * jax.random.normal(lk[10], (1, D), jnp.float32),
            ln2_b=0.05 * jax.random.normal(lk[11], (1, D), jnp.float32),
            w_qkv_t=in_proj_w.T, b_qkv=in_proj_b[None, :],
            w_o_t=out_w.T, b_o=out_b[None, :],
            w_fc_t=fc_w.T, b_fc=fc_b[None, :],
            w_proj_t=pr_w.T, b_proj=pr_b[None, :],
        ))
    return params


# ------------------------- pure-JAX reference check -------------------------
# Mirrors the kernel's precision policy (bf16 MXU operands, fp32 accumulation,
# fp32 LayerNorm stats, fp32 softmax) so the comparison isolates kernel bugs.

def _ref_forward(x, params, skip_last_layer=True):
    f32, bf16 = jnp.float32, jnp.bfloat16

    def bdot(a, b):
        return jnp.dot(a.astype(bf16), b.astype(bf16),
                       preferred_element_type=f32)

    B, C, H, W = x.shape
    ps, Dm, heads = params['patch_size'], params['width'], params['heads']
    Hp, Wp = H // ps, W // ps
    patches = x.reshape(B, C, Hp, ps, Wp, ps).transpose(0, 2, 4, 1, 3, 5)
    patches = patches.reshape(B, Hp * Wp, C * ps * ps)
    emb = bdot(patches, params['conv_w_t'])
    cls = jnp.broadcast_to(params['class_embedding'][None, None, :], (B, 1, Dm))
    xs = jnp.concatenate([cls, emb], axis=1)
    S = xs.shape[1]
    xs = xs + params['positional_embedding'][:S][None]
    xs = _ln(xs, params['ln_pre_g'], params['ln_pre_b'])

    hd = Dm // heads
    for p in params['layers']:
        h = _ln(xs, p['ln1_g'], p['ln1_b'])
        qkv = bdot(h, p['w_qkv_t']) + p['b_qkv']
        q = qkv[..., :Dm] * (hd ** -0.5)
        k, v = qkv[..., Dm:2 * Dm], qkv[..., 2 * Dm:]
        qh = q.reshape(B, S, heads, hd).astype(bf16)
        kh = k.reshape(B, S, heads, hd).astype(bf16)
        vh = v.reshape(B, S, heads, hd).astype(bf16)
        s = jnp.einsum('bqhd,bkhd->bhqk', qh, kh, preferred_element_type=f32)
        a = jax.nn.softmax(s, axis=-1)
        o = jnp.einsum('bhqk,bkhd->bqhd', a.astype(bf16), vh,
                       preferred_element_type=f32).reshape(B, S, Dm)
        xs = xs + (bdot(o, p['w_o_t']) + p['b_o'])
        h2 = _ln(xs, p['ln2_g'], p['ln2_b'])
        f = bdot(h2, p['w_fc_t']) + p['b_fc']
        f = f * jax.nn.sigmoid(1.702 * f)
        xs = xs + (bdot(f, p['w_proj_t']) + p['b_proj'])

    if skip_last_layer:
        xs = _ln(xs, params['ln_post_g'], params['ln_post_b'])
    else:
        xs = bdot(xs, params['proj'])
    return xs


if __name__ == "__main__":
    key = jax.random.PRNGKey(0)
    kp, kx = jax.random.split(key)
    input_resolution, patch_size = 16, 4
    width, layers, heads, output_dim = 32, 2, 4, 32
    params = init_params(kp, input_resolution, patch_size, width, layers,
                         heads, output_dim)
    x = jax.random.normal(kx, (2, 3, input_resolution, input_resolution),
                          jnp.float32)

    out = mplug_visual_transformer_forward(x, params, skip_last_layer=True)
    out = jax.block_until_ready(out)

    S = (input_resolution // patch_size) ** 2 + 1
    assert out.shape == (2, S, width), out.shape
    ref = jax.block_until_ready(_ref_forward(x, params, skip_last_layer=True))
    err = float(jnp.max(jnp.abs(out - ref)))
    assert jnp.allclose(out, ref, atol=2e-2, rtol=2e-2), f"max abs err {err}"
    print("KERNEL_OK")
</pallas_src>

<mosaic_0001>
module attributes {stable_mosaic.version = 11 : i64} {
  func.func @_matmul_kernel(%arg0: i32, %arg1: i32, %arg2: i32, %arg3: memref<32x48xbf16, #tpu.memory_space<vmem>>, %arg4: memref<48x32xbf16, #tpu.memory_space<vmem>>, %arg5: memref<32x32xf32, #tpu.memory_space<vmem>>, %arg6: memref<32x32xf32, #tpu.memory_space<vmem>>) attributes {dimension_semantics = [#tpu.dimension_semantics<parallel>, #tpu.dimension_semantics<parallel>, #tpu.dimension_semantics<arbitrary>], iteration_bounds = array<i64: 1, 1, 1>, scalar_prefetch = 0 : i64, scratch_operands = 1 : i64, tpu.core_type = #tpu.core_type<tc>, window_params = [{transform_indices = @transform_0, window_bounds = array<i64: 32, 48>}, {transform_indices = @transform_1, window_bounds = array<i64: 48, 32>}, {transform_indices = @transform_2, window_bounds = array<i64: 32, 32>}]} {
    %c0_i32 = arith.constant 0 : i32
    %0 = arith.cmpi eq, %arg2, %c0_i32 : i32
    %1 = arith.extui %0 : i1 to i32
    %c0_i32_0 = arith.constant 0 : i32
    %2 = arith.cmpi ne, %1, %c0_i32_0 : i32
    scf.if %2 {
      %cst_10 = arith.constant 0.000000e+00 : f32
      %12 = vector.broadcast %cst_10 : f32 to vector<32x32xf32>
      %c0_11 = arith.constant 0 : index
      %c0_12 = arith.constant 0 : index
      %13 = vector.load %arg6[%c0_11, %c0_12] : memref<32x32xf32, #tpu.memory_space<vmem>>, vector<32x32xf32>
      tpu.vector_store %arg6[%c0_11, %c0_12], %12 {strides = array<i32>} : memref<32x32xf32, #tpu.memory_space<vmem>>, vector<32x32xf32>,
    } else {
    }
    %c0 = arith.constant 0 : index
    %c0_1 = arith.constant 0 : index
    %3 = vector.load %arg6[%c0, %c0_1] : memref<32x32xf32, #tpu.memory_space<vmem>>, vector<32x32xf32>
    %c0_2 = arith.constant 0 : index
    %c0_3 = arith.constant 0 : index
    %4 = vector.load %arg3[%c0_2, %c0_3] : memref<32x48xbf16, #tpu.memory_space<vmem>>, vector<32x48xbf16>
    %c0_4 = arith.constant 0 : index
    %c0_5 = arith.constant 0 : index
    %5 = vector.load %arg4[%c0_4, %c0_5] : memref<48x32xbf16, #tpu.memory_space<vmem>>, vector<48x32xbf16>
    %cst = arith.constant dense<0.000000e+00> : vector<32x32xf32>
    %6 = tpu.matmul %4, %5, %cst {dimension_numbers = #tpu.dot_dimension_numbers<[1], [0], [0], [1], [0, 0, 1, 1], [], []>} : vector<32x48xbf16>, vector<48x32xbf16>, vector<32x32xf32> -> vector<32x32xf32>
    %7 = arith.addf %3, %6 : vector<32x32xf32>
    %c0_6 = arith.constant 0 : index
    %c0_7 = arith.constant 0 : index
    %8 = vector.load %arg6[%c0_6, %c0_7] : memref<32x32xf32, #tpu.memory_space<vmem>>, vector<32x32xf32>
    tpu.vector_store %arg6[%c0_6, %c0_7], %7 {strides = array<i32>} : memref<32x32xf32, #tpu.memory_space<vmem>>, vector<32x32xf32>,
    %c0_i32_8 = arith.constant 0 : i32
    %9 = arith.cmpi eq, %arg2, %c0_i32_8 : i32
    %10 = arith.extui %9 : i1 to i32
    %c0_i32_9 = arith.constant 0 : i32
    %11 = arith.cmpi ne, %10, %c0_i32_9 : i32
    scf.if %11 {
      %c0_10 = arith.constant 0 : index
      %c0_11 = arith.constant 0 : index
      %12 = vector.load %arg6[%c0_10, %c0_11] : memref<32x32xf32, #tpu.memory_space<vmem>>, vector<32x32xf32>
      %c0_12 = arith.constant 0 : index
      %c0_13 = arith.constant 0 : index
      %13 = vector.load %arg5[%c0_12, %c0_13] : memref<32x32xf32, #tpu.memory_space<vmem>>, vector<32x32xf32>
      tpu.vector_store %arg5[%c0_12, %c0_13], %12 {strides = array<i32>} : memref<32x32xf32, #tpu.memory_space<vmem>>, vector<32x32xf32>,
    } else {
    }
    return
  }
  func.func @transform_0(%arg0: i32, %arg1: i32, %arg2: i32) -> (i32, i32) {
    %c0_i32 = arith.constant 0 : i32
    return %arg0, %arg2 : i32, i32
  }
  func.func @transform_1(%arg0: i32, %arg1: i32, %arg2: i32) -> (i32, i32) {
    %c0_i32 = arith.constant 0 : i32
    return %arg2, %arg1 : i32, i32
  }
  func.func @transform_2(%arg0: i32, %arg1: i32, %arg2: i32) -> (i32, i32) {
    %c0_i32 = arith.constant 0 : i32
    return %arg0, %arg1 : i32, i32
  }
}

</mosaic_0001>

<bundles_post_ra>
// kernel: tpu_custom_call.1
= control target key start
LH: loop header
LB: loop body
LE: loop exit
PB: predicated region body
PF: predicated region fallthrough
CT: control target
= control target key end

     0   :  { %vm17_vm0 = vcmask 261120   ;;  %v188_v1 = vmov 0.0   ;;  %s237_s0 = inlined_call_operand.vmem [shape: bf16[32,48], index: 0, kind: input, shape index: {}]   ;;  %s238_s1 = inlined_call_operand.vmem [shape: bf16[48,32], index: 1, kind: input, shape index: {}]   ;;  %s239_s2 = inlined_call_operand.hbm [shape: f32[32,32], index: 2, kind: output, shape index: {}]  }
   0x1   :  { %v154_v0 = vld [vmem:[%s238_s1 + $0x10] sm:$0xff]  ;;  %18 = vst.msk [vmem:[#allocation2] sm:$0xff] %vm17_vm0, %v188_v1 }
   0x2   :  { %7 = vsyncpa [#allocation4], 0  ;;  %76 = vmatpush.bf16.msra.mxu0 %v154_v0  ;;  %155 = vmatpush.bf16.msra.mxu1 %v154_v0  ;;  %v153_v2 = vld [vmem:[%s238_s1 + $0x8] sm:$0xff]  ;;  %19 = vst.msk [vmem:[#allocation2 + $0x8] sm:$0xff] %vm17_vm0, %v188_v1  ;;  %v152_v3 = vld [vmem:[%s238_s1] sm:$0xff]  ;;  %vm64_vm1 = vcmask 392192  }
   0x3   :  { %20 = vst.msk [vmem:[#allocation2 + $0x10] sm:$0xff] %vm17_vm0, %v188_v1  ;;  %v150_v4 = vld [vmem:[%s237_s0] sm:$0xff]  ;;  %v151_v5 = vld [vmem:[%s237_s0 + $0x8] sm:$0xff]  ;;  %s189_s0 = smov [#allocation3]   ;;  %s116_s21 = sshll.u32 %s239_s2, 4  ;;  %s117_s21 = int_to_ptr.hbm [resolvable:$true] %s116_s21 }
   0x4   :  { %21 = vst.msk [vmem:[#allocation2 + $0x18] sm:$0xff] %vm17_vm0, %v188_v1  ;;  %s114_s1 = sshll.u32 %s189_s0, 4  ;;  %s190_s22 = smov 128   ;;  %s115_s1 = int_to_ptr.vmem [resolvable:$true] %s114_s1 }
   0x5   :  { %s191_s23 = smov 8  }
   0x6   :  { %77 = vmatpush.bf16.msra.mxu0 %v153_v2  ;;  %156 = vmatpush.bf16.msra.mxu1 %v153_v2 }
   0x8   :  { %v22_v6 = vld [vmem:[#allocation2] sm:$0xff] }
   0x9   :  { %v23_v12 = vld [vmem:[#allocation2 + $0x8] sm:$0xff] }
   0xa   :  { %78 = vmatpush.bf16.msra.mxu0 %v152_v3  ;;  %157 = vmatpush.bf16.msra.mxu1 %v152_v3  ;;  %v24_v7 = vld [vmem:[#allocation2 + $0x10] sm:$0xff] }
   0xb   :  { %v25_v13 = vld [vmem:[#allocation2 + $0x18] sm:$0xff] }
   0xd   :  { %148 = vmatmul.msk.bf16.vlgmr.msra.gmra.mxu0 %vm64_vm1, %v150_v4  ;;  %149 = vmatmul.msk.bf16.vlgmr.msra.gmra.mxu1 %vm64_vm1, %v151_v5 }
  0x8a   :  { %v80_v8 = vpop.f32.mrf.mxu0  ;;  %v85_v9 = vpop.f32.mrf.mxu1 }
  0x8b   :  { %v90_v10 = vadd.f32 %v80_v8, %v22_v6  ;;  %v92_v11 = vadd.f32 %v85_v9, %v24_v7 }
  0x8d   :  { %95 = vst.msk [vmem:[#allocation2] sm:$0xff] %vm17_vm0, %v90_v10 }
  0x8e   :  { %97 = vst.msk [vmem:[#allocation2 + $0x10] sm:$0xff] %vm17_vm0, %v92_v11 }
  0x92   :  { %v82_v14 = vpop.f32.mrf.mxu0  ;;  %v87_v15 = vpop.f32.mrf.mxu1 }
  0x93   :  { %v91_v16 = vadd.f32 %v82_v14, %v23_v12  ;;  %v93_v17 = vadd.f32 %v87_v15, %v25_v13 }
  0x94   :  { %v102_v18 = vld [vmem:[#allocation2] sm:$0xff] }
  0x95   :  { %96 = vst.msk [vmem:[#allocation2 + $0x8] sm:$0xff] %vm17_vm0, %v91_v16  ;;  %v104_v19 = vld [vmem:[#allocation2 + $0x10] sm:$0xff] }
  0x96   :  { %98 = vst.msk [vmem:[#allocation2 + $0x18] sm:$0xff] %vm17_vm0, %v93_v17 }
  0x97   :  { %106 = vst.msk [vmem:[#allocation3] sm:$0xff] %vm17_vm0, %v102_v18 }
  0x98   :  { %108 = vst.msk [vmem:[#allocation3 + $0x10] sm:$0xff] %vm17_vm0, %v104_v19 }
  0x9c   :  { %v103_v20 = vld [vmem:[#allocation2 + $0x8] sm:$0xff] }
  0x9d   :  { %v105_v21 = vld [vmem:[#allocation2 + $0x18] sm:$0xff]  ;;  %107 = vst.msk [vmem:[#allocation3 + $0x8] sm:$0xff] %vm17_vm0, %v103_v20 }
  0x9e   :  { %109 = vst.msk [vmem:[#allocation3 + $0x18] sm:$0xff] %vm17_vm0, %v105_v21 }
  0x9f   :  { %122 = dma.vmem_to_hbm [thread:$0]  %s115_s1, 512, %s117_s21, [#allocation4], %s190_s22, %s190_s22, %s191_s23  }
  0xa0   :  { %186 = dma.done.wait [#allocation4], 512  }
  0xa1   :  { %187 = vsyncadd [#allocation4], 4294966784 }
  0xa2   :  { %127 = vsyncpa [#allocation4], 1 }

</bundles_post_ra>
